<compile_context>
chip_gen: v6e
topology: v6e:2x2x1
jax: 0.10.0
libtpu: 0.0.40
codegen_flags: <defaults>
</compile_context>

<pallas_src>
import functools

import numpy as np
import jax
import jax.numpy as jnp
from jax import lax
from jax.experimental import pallas as pl
from jax.experimental.pallas import tpu as pltpu


# ----------------------------------------------------------------------------
# Pallas kernel: per-channel first-occurrence argmax (row-major flat index)
# ----------------------------------------------------------------------------
def _argmax_flat_kernel(hm_ref, out_ref, *, width, height):
    # hm_ref : VMEM (Kc, H, W) block of heatmap channels (native NCHW layout)
    # out_ref: VMEM (Kc, 1, 1) int32 — row-major flat argmax index per channel
    hm = hm_ref[...].astype(jnp.float32)          # single upcast (v5e: no bf16 VPU)
    kc, h, w = hm.shape

    # NaN guard: np.argmax returns the first NaN position; map NaN -> +inf so
    # it wins the max and the first-occurrence tie-break picks the same index.
    # TODO(synk): a genuine +inf occurring before the first NaN would win here,
    # which differs from np.argmax; acceptable for heatmap metrics.
    hm = jnp.where(jnp.isnan(hm), jnp.inf, hm)

    row = lax.broadcasted_iota(jnp.int32, (kc, h, w), 1)
    col = lax.broadcasted_iota(jnp.int32, (kc, h, w), 2)
    flat = row * width + col                      # row-major flat index

    # pass 1: per-channel max (lane reduce, then sublane reduce)
    mx = jnp.max(jnp.max(hm, axis=2, keepdims=True), axis=1, keepdims=True)
    # pass 2: first (row-major) position achieving the max
    cand = jnp.where(hm == mx, flat, height * width)
    first = jnp.min(jnp.min(cand, axis=2, keepdims=True), axis=1, keepdims=True)

    out_ref[...] = first


# ----------------------------------------------------------------------------
# Wrapper (file glue of the original module is synthesized by the caller)
# ----------------------------------------------------------------------------
def pb_mse_metric(prediction, targets, img_size, input_size, square=True):
    """prediction: (1, C, H, W) heatmaps (NCHW); targets: (C, 2); img_size: (w, h)."""
    _, C, H, W = prediction.shape
    assert H == input_size and W == input_size

    hm = prediction[0]                 # (C, H, W) native layout — no pad/reshape

    # --- channel blocking: largest divisor of C giving <= ~2 MiB blocks ------
    bytes_per_ch = H * W * 4
    target_kc = max(1, min(C, (2 << 20) // max(1, bytes_per_ch)))
    kc = 1
    for d in range(1, C + 1):
        if C % d == 0 and d <= target_kc:
            kc = d
    num_blocks = C // kc
    block_bytes = kc * bytes_per_ch

    # Raise scoped VMEM only if a double-buffered block would overflow defaults
    # (large input_size with kc == 1); keep headroom, cap well under physical.
    vmem_limit = None
    if 2 * block_bytes > 24 * 1024 * 1024:
        vmem_limit = min(2 * block_bytes + (8 << 20), 120 << 20)

    flat_idx = pl.pallas_call(
        functools.partial(_argmax_flat_kernel, width=W, height=H),
        out_shape=jax.ShapeDtypeStruct((C, 1, 1), jnp.int32),
        grid_spec=pltpu.PrefetchScalarGridSpec(
            num_scalar_prefetch=0,
            grid=(num_blocks,),
            in_specs=[pl.BlockSpec((kc, H, W), lambda b: (b, 0, 0))],
            out_specs=pl.BlockSpec((kc, 1, 1), lambda b: (b, 0, 0)),
        ),
        compiler_params=pltpu.CompilerParams(
            dimension_semantics=("parallel",),
            vmem_limit_bytes=vmem_limit),
        cost_estimate=pl.CostEstimate(
            flops=8 * C * H * W,
            transcendentals=0,
            bytes_accessed=C * H * W * prediction.dtype.itemsize + 4 * C),
    )(hm)

    # --- O(C) scalar post-processing (was a per-channel SMEM table before) ---
    flat_idx = flat_idx.reshape(C)
    r = (flat_idx // W).astype(jnp.float32)                    # unravel_index
    c = (flat_idx % W).astype(jnp.float32)

    sx = jnp.float32(float(img_size[0]) / float(input_size))
    sy = jnp.float32(float(img_size[1]) / float(input_size))
    px = c * sx                    # lm_pred[:, 0] = col * img_w / input_size
    py = r * sy                    # lm_pred[:, 1] = row * img_h / input_size

    tgt = jnp.nan_to_num(jnp.asarray(targets, dtype=jnp.float32).reshape(-1, 2))
    se = (tgt[:, 0] - px) ** 2 + (tgt[:, 1] - py) ** 2
    mse = jnp.sum(se) / jnp.float32(2 * C)     # mean over (num_classes, 2)
    return mse if square else jnp.sqrt(mse)    # sklearn mean_squared_error squared=


# ----------------------------------------------------------------------------
# Pure-numpy reference (mirrors the PyTorch module's math)
# ----------------------------------------------------------------------------
def _reference(pred_np, targets, img_size, input_size, square=True):
    C = pred_np.shape[1]
    lm_pred = np.zeros((C, 2))
    for i in range(C):
        r, c = np.unravel_index(pred_np[0, i].argmax(), (input_size, input_size))
        lm_pred[i, 0] = float(c)
        lm_pred[i, 1] = float(r)
    lm_pred[:, 0] *= float(img_size[0]) / float(input_size)
    lm_pred[:, 1] *= float(img_size[1]) / float(input_size)
    lm_targets = np.nan_to_num(np.asarray(targets, dtype=np.float64).reshape(-1, 2))
    mse = np.mean((lm_targets - lm_pred) ** 2)
    return mse if square else np.sqrt(mse)


# ----------------------------------------------------------------------------
if __name__ == "__main__":
    key = jax.random.PRNGKey(0)
    k1, k2 = jax.random.split(key)

    C, H, W = 4, 16, 16                       # small synthetic heatmap stack
    input_size = H
    prediction = jax.random.normal(k1, (1, C, H, W), dtype=jnp.float32)

    # TODO(synk): img_size is read from the PNG on disk in the original module;
    # synthesized here as a fixed (width, height).
    img_size = (512.0, 384.0)
    # TODO(synk): targets come from annotations.csv in the original module;
    # synthesized here (with a NaN to exercise nan_to_num).  np.array(...) makes
    # a writable copy (np.asarray of a jax array is read-only).
    targets = np.array(jax.random.uniform(k2, (C, 2), minval=0.0, maxval=400.0),
                       dtype=np.float32)
    targets[1, 0] = np.nan

    out = jax.block_until_ready(
        pb_mse_metric(prediction, targets, img_size, input_size, square=True))
    ref = _reference(np.asarray(prediction), targets, img_size, input_size,
                     square=True)
    np.testing.assert_allclose(float(out), ref, rtol=1e-4, atol=1e-3)

    out2 = jax.block_until_ready(
        pb_mse_metric(prediction, targets, img_size, input_size, square=False))
    ref2 = _reference(np.asarray(prediction), targets, img_size, input_size,
                      square=False)
    np.testing.assert_allclose(float(out2), ref2, rtol=1e-4, atol=1e-3)

    print("KERNEL_OK")
</pallas_src>

<mosaic_0001>
module attributes {stable_mosaic.version = 11 : i64} {
  func.func @_argmax_flat_kernel(%arg0: i32, %arg1: memref<4x16x16xf32, #tpu.memory_space<vmem>>, %arg2: memref<4x1x1xi32, #tpu.memory_space<vmem>>) attributes {dimension_semantics = [#tpu.dimension_semantics<parallel>], iteration_bounds = array<i64: 1>, scalar_prefetch = 0 : i64, scratch_operands = 0 : i64, tpu.core_type = #tpu.core_type<tc>, window_params = [{transform_indices = @transform_0, window_bounds = array<i64: 4, 16, 16>}, {transform_indices = @transform_1, window_bounds = array<i64: 4, 1, 1>}]} {
    %c0 = arith.constant 0 : index
    %c0_0 = arith.constant 0 : index
    %c0_1 = arith.constant 0 : index
    %0 = vector.load %arg1[%c0, %c0_0, %c0_1] : memref<4x16x16xf32, #tpu.memory_space<vmem>>, vector<4x16x16xf32>
    %1 = arith.cmpf one, %0, %0 : vector<4x16x16xf32>
    %cst = arith.constant 0x7F800000 : f32
    %2 = vector.broadcast %cst : f32 to vector<4x16x16xf32>
    %3 = arith.select %1, %2, %0 : vector<4x16x16xi1>, vector<4x16x16xf32>
    %4 = tpu.iota {dimensions = array<i32: 1>} : vector<4x16x16xi32>
    %5 = tpu.iota {dimensions = array<i32: 2>} : vector<4x16x16xi32>
    %c16_i32 = arith.constant 16 : i32
    %6 = vector.broadcast %c16_i32 : i32 to vector<4x16x16xi32>
    %7 = arith.muli %4, %6 : vector<4x16x16xi32>
    %8 = arith.addi %7, %5 : vector<4x16x16xi32>
    %cst_2 = arith.constant dense<0xFF800000> : vector<4x16xf32>
    %9 = vector.multi_reduction <maximumf>, %3, %cst_2 [2] : vector<4x16x16xf32> to vector<4x16xf32>
    %10 = vector.shape_cast %9 : vector<4x16xf32> to vector<4x16x1xf32>
    %cst_3 = arith.constant dense<0xFF800000> : vector<4x1xf32>
    %11 = vector.multi_reduction <maximumf>, %10, %cst_3 [1] : vector<4x16x1xf32> to vector<4x1xf32>
    %12 = vector.shape_cast %11 : vector<4x1xf32> to vector<4x1x1xf32>
    %13 = vector.broadcast %12 : vector<4x1x1xf32> to vector<4x16x16xf32>
    %14 = arith.cmpf oeq, %3, %13 : vector<4x16x16xf32>
    %c256_i32 = arith.constant 256 : i32
    %15 = vector.broadcast %c256_i32 : i32 to vector<4x16x16xi32>
    %16 = arith.select %14, %8, %15 : vector<4x16x16xi1>, vector<4x16x16xi32>
    %cst_4 = arith.constant dense<2147483647> : vector<4x16xi32>
    %17 = vector.multi_reduction <minsi>, %16, %cst_4 [2] : vector<4x16x16xi32> to vector<4x16xi32>
    %18 = vector.shape_cast %17 : vector<4x16xi32> to vector<4x16x1xi32>
    %cst_5 = arith.constant dense<2147483647> : vector<4x1xi32>
    %19 = vector.multi_reduction <minsi>, %18, %cst_5 [1] : vector<4x16x1xi32> to vector<4x1xi32>
    %20 = vector.shape_cast %19 : vector<4x1xi32> to vector<4x1x1xi32>
    %c0_6 = arith.constant 0 : index
    %c0_7 = arith.constant 0 : index
    %c0_8 = arith.constant 0 : index
    %21 = vector.load %arg2[%c0_6, %c0_7, %c0_8] : memref<4x1x1xi32, #tpu.memory_space<vmem>>, vector<4x1x1xi32>
    tpu.vector_store %arg2[%c0_6, %c0_7, %c0_8], %20 {strides = array<i32>} : memref<4x1x1xi32, #tpu.memory_space<vmem>>, vector<4x1x1xi32>,
    return
  }
  func.func @transform_0(%arg0: i32) -> (i32, i32, i32) {
    %c0_i32 = arith.constant 0 : i32
    %c0_i32_0 = arith.constant 0 : i32
    %c0_i32_1 = arith.constant 0 : i32
    return %arg0, %c0_i32, %c0_i32_0 : i32, i32, i32
  }
  func.func @transform_1(%arg0: i32) -> (i32, i32, i32) {
    %c0_i32 = arith.constant 0 : i32
    %c0_i32_0 = arith.constant 0 : i32
    %c0_i32_1 = arith.constant 0 : i32
    return %arg0, %c0_i32, %c0_i32_0 : i32, i32, i32
  }
}

</mosaic_0001>

<bundles_post_ra>
// kernel: tpu_custom_call.1
= control target key start
LH: loop header
LB: loop body
LE: loop exit
PB: predicated region body
PF: predicated region fallthrough
CT: control target
= control target key end

     0   :  { %6 = vsyncpa [#allocation3], 0  ;;  %s323_s6 = smov [#allocation2]   ;;  %s403_s0 = inlined_call_operand.hbm [shape: f32[4,16,16], index: 0, kind: input, shape index: {}]   ;;  %s404_s1 = inlined_call_operand.vmem [shape: s32[4,1,1], index: 1, kind: output, shape index: {}]  }
   0x1   :  { %s12_s7 = sshll.u32 %s323_s6, 4  ;;  %s13_s7 = int_to_ptr.vmem [resolvable:$true] %s12_s7 }
   0x2   :  { %s309_s8 = scalar_lea.vmem %s13_s7, 1024  ;;  %p314_p1 = scmp.lt.s32.totalorder %s13_s7, %s13_s7 }
   0x3   :  { %p310_p0 = scmp.ne.s32.totalorder %s13_s7, %s309_s8  ;;  %p315_p2 = scmp.lt.s32.totalorder %s309_s8, %s309_s8 }
   0x5   :  { %p316_p3 = por %p315_p2, %p314_p1 }
   0x7   :  { %p317_p4 = pnand %p316_p3, %p310_p0 }
   0x9   :  { %320 = shalt.err (!%p317_p4)
}
   0xa   :  { %s324_s9 = smov 128   ;;  %s325_s10 = smov 8  }
   0xb   :  { %18 = dma.hbm_to_vmem [thread:$0]  %s403_s0, 1024, %s13_s7, [#allocation3], %s324_s9, %s324_s9, %s325_s10  }
   0xc   :  { %321 = dma.done.wait [#allocation3], 1024  }
   0xd   :  { %322 = vsyncadd [#allocation3], 4294966272  ;;  %v24_v0 = vld [vmem:[#allocation2 + $0x10] sm:$0xff]  ;;  %vm55_vm0 = vcmask 130048   ;;  %v22_v1 = vld [vmem:[#allocation2] sm:$0xff]  ;;  %v46_v26 = vlaneseq }
   0xe   :  { %v25_v2 = vld [vmem:[#allocation2 + $0x18] sm:$0xff]  ;;  %vm32_vm1 = vcmp.ne.f32.partialorder %v24_v0, %v24_v0  ;;  %vm30_vm2 = vcmp.ne.f32.partialorder %v22_v1, %v22_v1  ;;  %v23_v3 = vld [vmem:[#allocation2 + $0x8] sm:$0xff]  ;;  %v26_v5 = vld [vmem:[#allocation2 + $0x20] sm:$0xff] }
   0xf   :  { %vm33_vm3 = vcmp.ne.f32.partialorder %v25_v2, %v25_v2  ;;  %v27_v4 = vld [vmem:[#allocation2 + $0x28] sm:$0xff]  ;;  %v339_v6 = vsel %vm32_vm1, inf, %v24_v0  ;;  %v341_v7 = vsel %vm30_vm2, inf, %v22_v1  ;;  %vm31_vm4 = vcmp.ne.f32.partialorder %v23_v3, %v23_v3  ;;  %v29_v12 = vld [vmem:[#allocation2 + $0x38] sm:$0xff]  ;;  %v28_v13 = vld [vmem:[#allocation2 + $0x30] sm:$0xff] }
  0x10   :  { %v343_v8 = vsel %vm33_vm3, inf, %v25_v2  ;;  %v62_v9 = vsel %vm55_vm0, %v339_v6, -inf  ;;  %v56_v10 = vsel %vm55_vm0, %v341_v7, -inf  ;;  %v349_v11 = vsel %vm31_vm4, inf, %v23_v3 }
  0x11   :  { %63 = vmax.xlane.f32.xlu1 %v62_v9  ;;  %57 = vmax.xlane.f32.xlu0 %v56_v10  ;;  %vm35_vm5 = vcmp.ne.f32.partialorder %v27_v4, %v27_v4  ;;  %vm34_vm6 = vcmp.ne.f32.partialorder %v26_v5, %v26_v5  ;;  %v65_v14 = vsel %vm55_vm0, %v343_v8, -inf  ;;  %v59_v15 = vsel %vm55_vm0, %v349_v11, -inf }
  0x12   :  { %v355_v16 = vsel %vm35_vm5, inf, %v27_v4  ;;  %v357_v17 = vsel %vm34_vm6, inf, %v26_v5  ;;  %vm37_vm7 = vcmp.ne.f32.partialorder %v29_v12, %v29_v12  ;;  %vm36_vm8 = vcmp.ne.f32.partialorder %v28_v13, %v28_v13 }
  0x13   :  { %v71_v18 = vsel %vm55_vm0, %v355_v16, -inf  ;;  %v68_v19 = vsel %vm55_vm0, %v357_v17, -inf  ;;  %v363_v20 = vsel %vm37_vm7, inf, %v29_v12  ;;  %v365_v21 = vsel %vm36_vm8, inf, %v28_v13 }
  0x14   :  { %v77_v22 = vsel %vm55_vm0, %v363_v20, -inf  ;;  %v74_v23 = vsel %vm55_vm0, %v365_v21, -inf  ;;  %v47_v29 = vshrl.u32 %v46_v26, 7  ;;  %v50_v45 = vand.u32 127, %v46_v26 }
  0x15   :  { %66 = vmax.xlane.f32.xlu1 %v65_v14  ;;  %60 = vmax.xlane.f32.xlu0 %v59_v15 }
  0x16   :  { %v48_v36 = vadd.s32 8, %v47_v29  ;;  %v51_v47 = vmul.u32 16, %v47_v29 }
  0x18   :  { %v52_v46 = vmul.u32 16, %v48_v36  ;;  %v53_v57 = vadd.s32 %v51_v47, %v50_v45 }
  0x19   :  { %72 = vmax.xlane.f32.xlu1 %v71_v18  ;;  %69 = vmax.xlane.f32.xlu0 %v68_v19 }
  0x1a   :  { %v54_v56 = vadd.s32 %v52_v46, %v50_v45 }
  0x1d   :  { %78 = vmax.xlane.f32.xlu1 %v77_v22  ;;  %75 = vmax.xlane.f32.xlu0 %v74_v23 }
  0x9a   :  { %v64_v24 = vpop.xlane.xlu1 %63  ;;  %v58_v25 = vpop.xlane.xlu0 %57 }
  0x9e   :  { %v67_v27 = vpop.xlane.xlu1 %66  ;;  %v61_v28 = vpop.xlane.xlu0 %60 }
  0x9f   :  { %v87_v30 = vmax.f32 %v64_v24, %v67_v27  ;;  %v80_v31 = vmax.f32 %v58_v25, %v61_v28 }
  0xa1   :  { %v88_v32 = vrot.slane %v87_v30, 4  ;;  %v81_v33 = vrot.slane %v80_v31, 4 }
  0xa2   :  { %v73_v34 = vpop.xlane.xlu1 %72  ;;  %v70_v35 = vpop.xlane.xlu0 %69 }
  0xa3   :  { %v89_v37 = vmax.f32 %v87_v30, %v88_v32  ;;  %v82_v38 = vmax.f32 %v80_v31, %v81_v33  ;;  %v94_v39 = vmax.f32 %v70_v35, %v73_v34 }
  0xa5   :  { %v90_v40 = vrot.slane %v89_v37, 2  ;;  %v83_v41 = vrot.slane %v82_v38, 2  ;;  %v95_v42 = vrot.slane %v94_v39, 4 }
  0xa6   :  { %v79_v43 = vpop.xlane.xlu1 %78  ;;  %v76_v44 = vpop.xlane.xlu0 %75 }
  0xa7   :  { %v91_v48 = vmax.f32 %v89_v37, %v90_v40  ;;  %v84_v49 = vmax.f32 %v82_v38, %v83_v41  ;;  %v96_v50 = vmax.f32 %v94_v39, %v95_v42  ;;  %v101_v51 = vmax.f32 %v76_v44, %v79_v43 }
  0xa9   :  { %v92_v52 = vrot.slane %v91_v48, 1  ;;  %v85_v53 = vrot.slane %v84_v49, 1  ;;  %v97_v54 = vrot.slane %v96_v50, 2  ;;  %v102_v55 = vrot.slane %v101_v51, 4 }
  0xab   :  { %v93_v58 = vmax.f32 %v91_v48, %v92_v52  ;;  %v86_v59 = vmax.f32 %v84_v49, %v85_v53  ;;  %v98_v60 = vmax.f32 %v96_v50, %v97_v54  ;;  %v103_v61 = vmax.f32 %v101_v51, %v102_v55 }
  0xad   :  { %v99_v62 = vrot.slane %v98_v60, 1  ;;  %v104_v63 = vrot.slane %v103_v61, 2  ;;  %vm109_vm9 = vcmp.eq.f32.partialorder %v349_v11, %v86_v59  ;;  %vm108_vm10 = vcmp.eq.f32.partialorder %v341_v7, %v86_v59 }
  0xae   :  { %v117_v0 = vsel %vm109_vm9, %v54_v56, 256  ;;  %v116_v1 = vsel %vm108_vm10, %v53_v57, 256  ;;  %vm111_vm11 = vcmp.eq.f32.partialorder %v343_v8, %v93_v58  ;;  %vm110_vm12 = vcmp.eq.f32.partialorder %v339_v6, %v93_v58 }
  0xaf   :  { %v100_v2 = vmax.f32 %v98_v60, %v99_v62  ;;  %v105_v3 = vmax.f32 %v103_v61, %v104_v63  ;;  %v139_v4 = vsel %vm55_vm0, %v117_v0, 2147483647  ;;  %v124_v5 = vsel %vm55_vm0, %v116_v1, 2147483647 }
  0xb0   :  { %v141_v9 = vshra.s32 %v139_v4, 16  ;;  %v126_v10 = vshra.s32 %v124_v5, 16  ;;  %v119_v12 = vsel %vm111_vm11, %v54_v56, 256  ;;  %v118_v13 = vsel %vm110_vm12, %v53_v57, 256 }
  0xb1   :  { %v106_v14 = vrot.slane %v105_v3, 1  ;;  %v169_v11 = vsel %vm55_vm0, %v119_v12, 2147483647  ;;  %v154_v7 = vsel %vm55_vm0, %v118_v13, 2147483647  ;;  %vm113_vm13 = vcmp.eq.f32.partialorder %v355_v16, %v100_v2 }
  0xb2   :  { %v143_v8 = vcvt.s32.f32 %v141_v9  ;;  %v128_v15 = vcvt.s32.f32 %v126_v10  ;;  %v171_v6 = vshra.s32 %v169_v11, 16  ;;  %v156_v18 = vshra.s32 %v154_v7, 16 }
  0xb3   :  { %v107_v19 = vmax.f32 %v105_v3, %v106_v14  ;;  %v121_v22 = vsel %vm113_vm13, %v54_v56, 256  ;;  %vm112_vm14 = vcmp.eq.f32.partialorder %v357_v17, %v100_v2  ;;  %v125_v37 = vand.u32 65535, %v124_v5 }
  0xb4   :  { %144 = vmin.xlane.f32.xlu1 %v143_v8  ;;  %129 = vmin.xlane.f32.xlu0 %v128_v15  ;;  %v173_v23 = vcvt.s32.f32 %v171_v6  ;;  %v199_v24 = vsel %vm55_vm0, %v121_v22, 2147483647  ;;  %v120_v25 = vsel %vm112_vm14, %v53_v57, 256  ;;  %v158_v26 = vcvt.s32.f32 %v156_v18 }
  0xb5   :  { %v184_v27 = vsel %vm55_vm0, %v120_v25, 2147483647  ;;  %vm115_vm15 = vcmp.eq.f32.partialorder %v363_v20, %v107_v19  ;;  %vm114_vm1 = vcmp.eq.f32.partialorder %v365_v21, %v107_v19  ;;  %v201_v16 = vshra.s32 %v199_v24, 16 }
  0xb6   :  { %v186_v28 = vshra.s32 %v184_v27, 16  ;;  %v123_v29 = vsel %vm115_vm15, %v54_v56, 256  ;;  %v122_v30 = vsel %vm114_vm1, %v53_v57, 256  ;;  %v140_v21 = vand.u32 65535, %v139_v4 }
  0xb7   :  { %v229_v31 = vsel %vm55_vm0, %v123_v29, 2147483647  ;;  %v214_v17 = vsel %vm55_vm0, %v122_v30, 2147483647  ;;  %v203_v32 = vcvt.s32.f32 %v201_v16  ;;  %v127_v41 = vcvt.s32.f32 %v125_v37 }
  0xb8   :  { %174 = vmin.xlane.f32.xlu1 %v173_v23  ;;  %159 = vmin.xlane.f32.xlu0 %v158_v26  ;;  %v188_v33 = vcvt.s32.f32 %v186_v28  ;;  %v231_v34 = vshra.s32 %v229_v31, 16  ;;  %v216_v35 = vshra.s32 %v214_v17, 16  ;;  %v142_v40 = vcvt.s32.f32 %v140_v21 }
  0xb9   :  { %v170_v42 = vand.u32 65535, %v169_v11  ;;  %v155_v43 = vand.u32 65535, %v154_v7  ;;  %v200_v50 = vand.u32 65535, %v199_v24  ;;  %v185_v51 = vand.u32 65535, %v184_v27 }
  0xba   :  { %v233_v36 = vcvt.s32.f32 %v231_v34  ;;  %v218_v20 = vcvt.s32.f32 %v216_v35  ;;  %v230_v58 = vand.u32 65535, %v229_v31  ;;  %v215_v59 = vand.u32 65535, %v214_v17 }
  0xbb   :  { %v172_v48 = vcvt.s32.f32 %v170_v42  ;;  %v157_v49 = vcvt.s32.f32 %v155_v43  ;;  %v202_v56 = vcvt.s32.f32 %v200_v50  ;;  %v187_v57 = vcvt.s32.f32 %v185_v51 }
  0xbc   :  { %204 = vmin.xlane.f32.xlu1 %v203_v32  ;;  %189 = vmin.xlane.f32.xlu0 %v188_v33  ;;  %v232_v0 = vcvt.s32.f32 %v230_v58  ;;  %v217_v1 = vcvt.s32.f32 %v215_v59  ;;  %vm288_vm15 = vcmask 0  }
  0xc0   :  { %234 = vmin.xlane.f32.xlu1 %v233_v36  ;;  %219 = vmin.xlane.f32.xlu0 %v218_v20 }
 0x13d   :  { %v145_v38 = vpop.xlane.xlu1 %144  ;;  %v130_v39 = vpop.xlane.xlu0 %129 }
 0x13e   :  { %vm146_vm0 = vcmp.eq.f32.partialorder %v143_v8, %v145_v38  ;;  %vm131_vm2 = vcmp.eq.f32.partialorder %v128_v15, %v130_v39  ;;  %v151_v4 = vcvt.f32.s32 %v145_v38  ;;  %v136_v5 = vcvt.f32.s32 %v130_v39 }
 0x13f   :  { %v147_v44 = vsel %vm146_vm0, %v142_v40, inf  ;;  %v132_v45 = vsel %vm131_vm2, %v127_v41, inf }
 0x140   :  { %148 = vmin.xlane.f32.xlu1 %v147_v44  ;;  %133 = vmin.xlane.f32.xlu0 %v132_v45  ;;  %v152_v9 = vshll.u32 %v151_v4, 16  ;;  %v137_v14 = vshll.u32 %v136_v5, 16 }
 0x141   :  { %v175_v46 = vpop.xlane.xlu1 %174  ;;  %v160_v47 = vpop.xlane.xlu0 %159 }
 0x142   :  { %vm176_vm3 = vcmp.eq.f32.partialorder %v173_v23, %v175_v46  ;;  %vm161_vm4 = vcmp.eq.f32.partialorder %v158_v26, %v160_v47  ;;  %v181_v10 = vcvt.f32.s32 %v175_v46  ;;  %v166_v11 = vcvt.f32.s32 %v160_v47 }
 0x143   :  { %v177_v52 = vsel %vm176_vm3, %v172_v48, inf  ;;  %v162_v53 = vsel %vm161_vm4, %v157_v49, inf }
 0x144   :  { %178 = vmin.xlane.f32.xlu1 %v177_v52  ;;  %163 = vmin.xlane.f32.xlu0 %v162_v53  ;;  %v182_v18 = vshll.u32 %v181_v10, 16  ;;  %v167_v25 = vshll.u32 %v166_v11, 16 }
 0x145   :  { %v205_v54 = vpop.xlane.xlu1 %204  ;;  %v190_v55 = vpop.xlane.xlu0 %189 }
 0x146   :  { %vm206_vm5 = vcmp.eq.f32.partialorder %v203_v32, %v205_v54  ;;  %vm191_vm6 = vcmp.eq.f32.partialorder %v188_v33, %v190_v55  ;;  %v211_v19 = vcvt.f32.s32 %v205_v54  ;;  %v196_v22 = vcvt.f32.s32 %v190_v55 }
 0x147   :  { %v207_v60 = vsel %vm206_vm5, %v202_v56, inf  ;;  %v192_v61 = vsel %vm191_vm6, %v187_v57, inf }
 0x148   :  { %208 = vmin.xlane.f32.xlu1 %v207_v60  ;;  %193 = vmin.xlane.f32.xlu0 %v192_v61  ;;  %v212_v31 = vshll.u32 %v211_v19, 16  ;;  %v197_v17 = vshll.u32 %v196_v22, 16 }
 0x149   :  { %v235_v62 = vpop.xlane.xlu1 %234  ;;  %v220_v63 = vpop.xlane.xlu0 %219 }
 0x14a   :  { %vm236_vm7 = vcmp.eq.f32.partialorder %v233_v36, %v235_v62  ;;  %vm221_vm8 = vcmp.eq.f32.partialorder %v218_v20, %v220_v63  ;;  %v241_v32 = vcvt.f32.s32 %v235_v62  ;;  %v226_v33 = vcvt.f32.s32 %v220_v63 }
 0x14b   :  { %v237_v2 = vsel %vm236_vm7, %v232_v0, inf  ;;  %v222_v3 = vsel %vm221_vm8, %v217_v1, inf }
 0x14c   :  { %238 = vmin.xlane.f32.xlu1 %v237_v2  ;;  %223 = vmin.xlane.f32.xlu0 %v222_v3  ;;  %v242_v42 = vshll.u32 %v241_v32, 16  ;;  %v227_v43 = vshll.u32 %v226_v33, 16 }
 0x1c9   :  { %v149_v12 = vpop.xlane.xlu1 %148  ;;  %v134_v13 = vpop.xlane.xlu0 %133 }
 0x1ca   :  { %v150_v7 = vcvt.f32.s32 %v149_v12  ;;  %v135_v8 = vcvt.f32.s32 %v134_v13 }
 0x1cc   :  { %v153_v15 = vadd.s32 %v152_v9, %v150_v7  ;;  %v138_v6 = vadd.s32 %v137_v14, %v135_v8 }
 0x1cd   :  { %v179_v23 = vpop.xlane.xlu1 %178  ;;  %v164_v24 = vpop.xlane.xlu0 %163 }
 0x1ce   :  { %vm244_vm9 = vcmp.lt.s32.totalorder %v138_v6, %v153_v15  ;;  %v180_v26 = vcvt.f32.s32 %v179_v23  ;;  %v165_v27 = vcvt.f32.s32 %v164_v24 }
 0x1cf   :  { %v245_v16 = vsel %vm244_vm9, %v138_v6, %v153_v15 }
 0x1d0   :  { %v246_v28 = vrot.slane %v245_v16, 4  ;;  %v183_v29 = vadd.s32 %v182_v18, %v180_v26  ;;  %v168_v30 = vadd.s32 %v167_v25, %v165_v27 }
 0x1d1   :  { %v209_v34 = vpop.xlane.xlu1 %208  ;;  %v194_v35 = vpop.xlane.xlu0 %193 }
 0x1d2   :  { %vm247_vm10 = vcmp.lt.s32.totalorder %v245_v16, %v246_v28  ;;  %vm255_vm11 = vcmp.lt.s32.totalorder %v168_v30, %v183_v29  ;;  %v210_v36 = vcvt.f32.s32 %v209_v34  ;;  %v195_v20 = vcvt.f32.s32 %v194_v35 }
 0x1d3   :  { %v248_v21 = vsel %vm247_vm10, %v245_v16, %v246_v28  ;;  %v256_v37 = vsel %vm255_vm11, %v168_v30, %v183_v29 }
 0x1d4   :  { %v249_v38 = vrot.slane %v248_v21, 2  ;;  %v257_v39 = vrot.slane %v256_v37, 4  ;;  %v213_v40 = vadd.s32 %v212_v31, %v210_v36  ;;  %v198_v41 = vadd.s32 %v197_v17, %v195_v20 }
 0x1d5   :  { %v239_v44 = vpop.xlane.xlu1 %238  ;;  %v224_v45 = vpop.xlane.xlu0 %223 }
 0x1d6   :  { %vm250_vm12 = vcmp.lt.s32.totalorder %v248_v21, %v249_v38  ;;  %vm258_vm13 = vcmp.lt.s32.totalorder %v256_v37, %v257_v39  ;;  %vm266_vm14 = vcmp.lt.s32.totalorder %v198_v41, %v213_v40  ;;  %v240_v46 = vcvt.f32.s32 %v239_v44 }
 0x1d7   :  { %v251_v47 = vsel %vm250_vm12, %v248_v21, %v249_v38  ;;  %v259_v48 = vsel %vm258_vm13, %v256_v37, %v257_v39  ;;  %v267_v49 = vsel %vm266_vm14, %v198_v41, %v213_v40  ;;  %v225_v50 = vcvt.f32.s32 %v224_v45 }
 0x1d8   :  { %v252_v51 = vrot.slane %v251_v47, 1  ;;  %v260_v52 = vrot.slane %v259_v48, 2  ;;  %v268_v53 = vrot.slane %v267_v49, 4  ;;  %v243_v54 = vadd.s32 %v242_v42, %v240_v46 }
 0x1d9   :  { %v228_v55 = vadd.s32 %v227_v43, %v225_v50 }
 0x1da   :  { %vm253_vm1 = vcmp.lt.s32.totalorder %v251_v47, %v252_v51  ;;  %vm261_vm0 = vcmp.lt.s32.totalorder %v259_v48, %v260_v52  ;;  %vm269_vm2 = vcmp.lt.s32.totalorder %v267_v49, %v268_v53 }
 0x1db   :  { %v254_v56 = vsel %vm253_vm1, %v251_v47, %v252_v51  ;;  %v262_v57 = vsel %vm261_vm0, %v259_v48, %v260_v52  ;;  %v270_v58 = vsel %vm269_vm2, %v267_v49, %v268_v53  ;;  %vm277_vm3 = vcmp.lt.s32.totalorder %v228_v55, %v243_v54 }
 0x1dc   :  { %289 = vst.msk [vmem:[%s404_s1] sm:$0x1] %vm288_vm15, %v254_v56  ;;  %v263_v59 = vrot.slane %v262_v57, 1  ;;  %v271_v60 = vrot.slane %v270_v58, 2  ;;  %v278_v61 = vsel %vm277_vm3, %v228_v55, %v243_v54 }
 0x1dd   :  { %v279_v62 = vrot.slane %v278_v61, 4 }
 0x1de   :  { %vm264_vm4 = vcmp.lt.s32.totalorder %v262_v57, %v263_v59  ;;  %vm272_vm5 = vcmp.lt.s32.totalorder %v270_v58, %v271_v60 }
 0x1df   :  { %v265_v63 = vsel %vm264_vm4, %v262_v57, %v263_v59  ;;  %v273_v0 = vsel %vm272_vm5, %v270_v58, %v271_v60  ;;  %vm280_vm6 = vcmp.lt.s32.totalorder %v278_v61, %v279_v62 }
 0x1e0   :  { %290 = vst.msk [vmem:[%s404_s1 + $0x1] sm:$0x1] %vm288_vm15, %v265_v63  ;;  %v274_v1 = vrot.slane %v273_v0, 1  ;;  %v281_v2 = vsel %vm280_vm6, %v278_v61, %v279_v62 }
 0x1e1   :  { %v282_v3 = vrot.slane %v281_v2, 2 }
 0x1e2   :  { %vm275_vm7 = vcmp.lt.s32.totalorder %v273_v0, %v274_v1 }
 0x1e3   :  { %v276_v4 = vsel %vm275_vm7, %v273_v0, %v274_v1  ;;  %vm283_vm8 = vcmp.lt.s32.totalorder %v281_v2, %v282_v3 }
 0x1e4   :  { %291 = vst.msk [vmem:[%s404_s1 + $0x2] sm:$0x1] %vm288_vm15, %v276_v4  ;;  %v284_v5 = vsel %vm283_vm8, %v281_v2, %v282_v3 }
 0x1e5   :  { %v285_v9 = vrot.slane %v284_v5, 1 }
 0x1e7   :  { %vm286_vm9 = vcmp.lt.s32.totalorder %v284_v5, %v285_v9 }
 0x1e8   :  { %v287_v10 = vsel %vm286_vm9, %v284_v5, %v285_v9 }
 0x1e9   :  { %292 = vst.msk [vmem:[%s404_s1 + $0x3] sm:$0x1] %vm288_vm15, %v287_v10 }
 0x1ea   :  { %297 = vsyncpa [#allocation3], 1 }

</bundles_post_ra>
